<compile_context>
chip_gen: v7x
topology: tpu7x:2x2x1
jax: 0.10.0
libtpu: 0.0.40
codegen_flags: <defaults>
</compile_context>

<pallas_src>
import math
from functools import partial

import jax
import jax.numpy as jnp
from jax.experimental import pallas as pl
from jax.experimental.pallas import tpu as pltpu

HIDDEN = 400  # fixed by the module definition (fc1 / fc3 output width)


def blackattack_kernel(x_ref, eps_ref,
                       w1_ref, b1_ref, ws_ref, bs_ref,
                       w3_ref, b3_ref, w4_ref, b4_ref,
                       delta_ref, logvar_ref, logprob_ref):
    # x_ref:   (TB, D)   flattened image rows for this grid step (f32)
    # eps_ref: (TB, L)   standard-normal noise (f32)
    # w1/w4:   bf16 (in, out); ws/w3: f32 (in, out); b*: f32 (1, out)
    # outputs: delta (TB, D), logvar (TB, L), logprob (TB, 1)
    x = x_ref[...]
    eps = eps_ref[...]

    # ---- encode: logvar = fc_sig(relu(fc1(x))) ----
    # fc1 runs in bf16 (operands cast, f32 accumulate) for full MXU rate and
    # half the weight DMA; fc_sig stays f32 so logvar / log-prob remain tight.
    h1 = jnp.dot(x.astype(w1_ref.dtype), w1_ref[...],
                 preferred_element_type=jnp.float32) + b1_ref[...]
    h1 = jnp.maximum(h1, 0.0)
    logvar = jnp.dot(h1, ws_ref[...],
                     preferred_element_type=jnp.float32) + bs_ref[...]
    logvar_ref[...] = logvar.astype(logvar_ref.dtype)

    # ---- reparameterize + MultivariateNormal log_prob ----
    std = jnp.exp(0.5 * logvar)
    z = eps * std
    lat = logvar.shape[-1]
    logdet = 0.5 * jnp.sum(logvar, axis=-1, keepdims=True)      # sum(log std)
    quad = jnp.sum(z * eps, axis=-1, keepdims=True)             # == sum(z^2 / std)
    logprob = -0.5 * (lat * math.log(2.0 * math.pi) + logdet + quad)
    logprob_ref[...] = logprob.astype(logprob_ref.dtype)

    # ---- decode: delta = fc4(relu(fc3(z))) ----
    h3 = jnp.dot(z, w3_ref[...],
                 preferred_element_type=jnp.float32) + b3_ref[...]
    h3 = jnp.maximum(h3, 0.0)
    delta = jnp.dot(h3.astype(w4_ref.dtype), w4_ref[...],
                    preferred_element_type=jnp.float32) + b4_ref[...]
    delta_ref[...] = delta.astype(delta_ref.dtype)


def prepare_params(torch_params, *, big_weight_dtype=jnp.bfloat16):
    """One-time conversion of PyTorch-layout Linear params (weights (out,in),
    biases (out,)) to kernel layout: weights (in,out), biases (1,out).
    Call this ONCE at parameter-load time, not per forward."""
    f32 = jnp.float32
    return dict(
        w1=jnp.transpose(torch_params["fc1_w"]).astype(big_weight_dtype),  # (D, 400)
        b1=torch_params["fc1_b"].reshape(1, -1).astype(f32),
        ws=jnp.transpose(torch_params["fc_sig_w"]).astype(f32),            # (400, L)
        bs=torch_params["fc_sig_b"].reshape(1, -1).astype(f32),
        w3=jnp.transpose(torch_params["fc3_w"]).astype(f32),               # (L, 400)
        b3=torch_params["fc3_b"].reshape(1, -1).astype(f32),
        w4=jnp.transpose(torch_params["fc4_w"]).astype(big_weight_dtype),  # (400, D)
        b4=torch_params["fc4_b"].reshape(1, -1).astype(f32),
    )


@partial(jax.jit, static_argnames=("row_tile",))
def blackattack_forward(x, eps, kp, *, row_tile=256):
    """x: (B, C, H, W) with C == 1 (the module's squeeze(1) requires it).
    eps: (B, latent) standard-normal noise (stands in for torch.randn_like).
    kp: kernel-layout params from prepare_params().
    Returns (delta (B,C,H,W), logvar (B,latent), log_prob_a (B,))."""
    b, c, h, w = x.shape
    assert c == 1, "forward() squeezes dim 1; channel dim must be 1"
    d = c * h * w
    latent = kp["ws"].shape[1]
    assert eps.shape == (b, latent)

    # Row tiling: whole batch in one step for small batches; for big batches
    # tile at row_tile (multiple of 8) and pad the remainder.
    tb = b if b <= row_tile else row_tile
    n_steps = pl.cdiv(b, tb)
    bp = n_steps * tb
    x2 = x.reshape(b, d)
    eps2 = eps
    if bp != b:
        x2 = jnp.pad(x2, ((0, bp - b), (0, 0)))
        eps2 = jnp.pad(eps2, ((0, bp - b), (0, 0)))

    row = lambda i: (i, 0)      # batch-row tiles
    full = lambda i: (0, 0)     # weights/biases: resident across grid steps

    delta2, logvar, logprob = pl.pallas_call(
        blackattack_kernel,
        out_shape=(
            jax.ShapeDtypeStruct((bp, d), x.dtype),
            jax.ShapeDtypeStruct((bp, latent), x.dtype),
            jax.ShapeDtypeStruct((bp, 1), x.dtype),
        ),
        grid=(n_steps,),
        in_specs=[
            pl.BlockSpec((tb, d), row),              # x rows
            pl.BlockSpec((tb, latent), row),         # eps rows
            pl.BlockSpec((d, HIDDEN), full),         # fc1 W (bf16)
            pl.BlockSpec((1, HIDDEN), full),         # fc1 b
            pl.BlockSpec((HIDDEN, latent), full),    # fc_sig W (f32)
            pl.BlockSpec((1, latent), full),         # fc_sig b
            pl.BlockSpec((latent, HIDDEN), full),    # fc3 W (f32)
            pl.BlockSpec((1, HIDDEN), full),         # fc3 b
            pl.BlockSpec((HIDDEN, d), full),         # fc4 W (bf16)
            pl.BlockSpec((1, d), full),              # fc4 b
        ],
        out_specs=(
            pl.BlockSpec((tb, d), row),              # delta (lane-dense)
            pl.BlockSpec((tb, latent), row),         # logvar (lane-sparse, accepted)
            pl.BlockSpec((tb, 1), row),              # logprob (lane-sparse, accepted)
        ),
        compiler_params=pltpu.CompilerParams(
            # Only matters when the grid has >1 step (large batches); no-op on
            # the single-step small-batch path and on v5e/v6e (1 TC).
            dimension_semantics=("parallel",),
        ),
    )(x2, eps2, kp["w1"], kp["b1"], kp["ws"], kp["bs"],
      kp["w3"], kp["b3"], kp["w4"], kp["b4"])

    delta = delta2[:b].reshape(b, c, h, w)
    return delta, logvar[:b], logprob[:b].reshape(b)


def _reference(x, eps, params):
    """Pure-JAX f32 mirror of BlackAttack.forward (per-row diagonal Gaussian)."""
    b, c, h, w = x.shape
    d = c * h * w
    x2 = x.reshape(b, d)
    h1 = jnp.maximum(x2 @ params["fc1_w"].T + params["fc1_b"], 0.0)
    logvar = h1 @ params["fc_sig_w"].T + params["fc_sig_b"]
    std = jnp.exp(0.5 * logvar)
    z = eps * std
    lat = logvar.shape[-1]
    logprob = -0.5 * (lat * math.log(2.0 * math.pi)
                      + jnp.sum(jnp.log(std), axis=-1)
                      + jnp.sum((z * z) / std, axis=-1))
    h3 = jnp.maximum(z @ params["fc3_w"].T + params["fc3_b"], 0.0)
    delta = (h3 @ params["fc4_w"].T + params["fc4_b"]).reshape(b, c, h, w)
    return delta, logvar, logprob


if __name__ == "__main__":
    batch, chan, H, W = 16, 1, 16, 16       # chan must be 1 (forward squeezes dim 1)
    input_size = chan * H * W               # 256
    latent = 32

    key = jax.random.PRNGKey(0)
    keys = jax.random.split(key, 10)

    x = jax.random.normal(keys[0], (batch, chan, H, W), dtype=jnp.float32)
    eps = jax.random.normal(keys[1], (batch, latent), dtype=jnp.float32)  # randn_like(std)

    def linear_init(kw, kb, fan_in, fan_out):
        # PyTorch nn.Linear defaults: U(-1/sqrt(fan_in), 1/sqrt(fan_in))
        bound = 1.0 / math.sqrt(fan_in)
        wgt = jax.random.uniform(kw, (fan_out, fan_in), jnp.float32, -bound, bound)
        bia = jax.random.uniform(kb, (fan_out,), jnp.float32, -bound, bound)
        return wgt, bia

    params = {}
    params["fc1_w"], params["fc1_b"] = linear_init(keys[2], keys[3], input_size, HIDDEN)
    params["fc_sig_w"], params["fc_sig_b"] = linear_init(keys[4], keys[5], HIDDEN, latent)
    params["fc3_w"], params["fc3_b"] = linear_init(keys[6], keys[7], latent, HIDDEN)
    params["fc4_w"], params["fc4_b"] = linear_init(keys[8], keys[9], HIDDEN, input_size)

    # One-time layout/dtype conversion (not in the per-call hot path).
    kparams = prepare_params(params)

    delta, logvar, log_prob_a = blackattack_forward(x, eps, kparams)
    delta = jax.block_until_ready(delta)
    logvar = jax.block_until_ready(logvar)
    log_prob_a = jax.block_until_ready(log_prob_a)

    d_ref, lv_ref, lp_ref = _reference(x, eps, params)

    assert delta.shape == (batch, chan, H, W), delta.shape
    assert logvar.shape == (batch, latent), logvar.shape
    assert log_prob_a.shape == (batch,), log_prob_a.shape
    # Tolerances account for bf16 fc1/fc4 weights (f32 accumulation); the
    # fc_sig / log-prob path stays f32 so logvar & log_prob remain tight.
    assert jnp.allclose(logvar, lv_ref, atol=1e-2, rtol=1e-3), (
        float(jnp.max(jnp.abs(logvar - lv_ref))))
    assert jnp.allclose(log_prob_a, lp_ref, atol=0.15, rtol=1e-2), (
        float(jnp.max(jnp.abs(log_prob_a - lp_ref))))
    assert jnp.allclose(delta, d_ref, atol=3e-2, rtol=1e-2), (
        float(jnp.max(jnp.abs(delta - d_ref))))

    print("KERNEL_OK")
</pallas_src>

<mosaic_0001>
module attributes {stable_mosaic.version = 11 : i64} {
  func.func @blackattack_kernel(%arg0: i32, %arg1: memref<16x256xf32, #tpu.memory_space<vmem>>, %arg2: memref<16x32xf32, #tpu.memory_space<vmem>>, %arg3: memref<256x400xbf16, #tpu.memory_space<vmem>>, %arg4: memref<1x400xf32, #tpu.memory_space<vmem>>, %arg5: memref<400x32xf32, #tpu.memory_space<vmem>>, %arg6: memref<1x32xf32, #tpu.memory_space<vmem>>, %arg7: memref<32x400xf32, #tpu.memory_space<vmem>>, %arg8: memref<1x400xf32, #tpu.memory_space<vmem>>, %arg9: memref<400x256xbf16, #tpu.memory_space<vmem>>, %arg10: memref<1x256xf32, #tpu.memory_space<vmem>>, %arg11: memref<16x256xf32, #tpu.memory_space<vmem>>, %arg12: memref<16x32xf32, #tpu.memory_space<vmem>>, %arg13: memref<16x1xf32, #tpu.memory_space<vmem>>) attributes {dimension_semantics = [#tpu.dimension_semantics<parallel>], iteration_bounds = array<i64: 1>, scalar_prefetch = 0 : i64, scratch_operands = 0 : i64, tpu.core_type = #tpu.core_type<tc>, window_params = [{transform_indices = @transform_0, window_bounds = array<i64: 16, 256>}, {transform_indices = @transform_1, window_bounds = array<i64: 16, 32>}, {pipeline_mode = #tpu.pipeline_mode<synchronous>, transform_indices = @transform_2, window_bounds = array<i64: 256, 400>}, {pipeline_mode = #tpu.pipeline_mode<synchronous>, transform_indices = @transform_3, window_bounds = array<i64: 1, 400>}, {pipeline_mode = #tpu.pipeline_mode<synchronous>, transform_indices = @transform_4, window_bounds = array<i64: 400, 32>}, {pipeline_mode = #tpu.pipeline_mode<synchronous>, transform_indices = @transform_5, window_bounds = array<i64: 1, 32>}, {pipeline_mode = #tpu.pipeline_mode<synchronous>, transform_indices = @transform_6, window_bounds = array<i64: 32, 400>}, {pipeline_mode = #tpu.pipeline_mode<synchronous>, transform_indices = @transform_7, window_bounds = array<i64: 1, 400>}, {pipeline_mode = #tpu.pipeline_mode<synchronous>, transform_indices = @transform_8, window_bounds = array<i64: 400, 256>}, {pipeline_mode = #tpu.pipeline_mode<synchronous>, transform_indices = @transform_9, window_bounds = array<i64: 1, 256>}, {transform_indices = @transform_10, window_bounds = array<i64: 16, 256>}, {transform_indices = @transform_11, window_bounds = array<i64: 16, 32>}, {transform_indices = @transform_12, window_bounds = array<i64: 16, 1>}]} {
    %c0 = arith.constant 0 : index
    %c0_0 = arith.constant 0 : index
    %0 = vector.load %arg1[%c0, %c0_0] : memref<16x256xf32, #tpu.memory_space<vmem>>, vector<16x256xf32>
    %c0_1 = arith.constant 0 : index
    %c0_2 = arith.constant 0 : index
    %1 = vector.load %arg2[%c0_1, %c0_2] : memref<16x32xf32, #tpu.memory_space<vmem>>, vector<16x32xf32>
    %2 = arith.truncf %0 : vector<16x256xf32> to vector<16x256xbf16>
    %c0_3 = arith.constant 0 : index
    %c0_4 = arith.constant 0 : index
    %3 = vector.load %arg3[%c0_3, %c0_4] : memref<256x400xbf16, #tpu.memory_space<vmem>>, vector<256x400xbf16>
    %cst = arith.constant dense<0.000000e+00> : vector<16x400xf32>
    %4 = tpu.matmul %2, %3, %cst {dimension_numbers = #tpu.dot_dimension_numbers<[1], [0], [0], [1], [0, 0, 1, 1], [], []>} : vector<16x256xbf16>, vector<256x400xbf16>, vector<16x400xf32> -> vector<16x400xf32>
    %c0_5 = arith.constant 0 : index
    %c0_6 = arith.constant 0 : index
    %5 = vector.load %arg4[%c0_5, %c0_6] : memref<1x400xf32, #tpu.memory_space<vmem>>, vector<1x400xf32>
    %6 = vector.broadcast %5 : vector<1x400xf32> to vector<16x400xf32>
    %7 = arith.addf %4, %6 : vector<16x400xf32>
    %cst_7 = arith.constant 0.000000e+00 : f32
    %8 = vector.broadcast %cst_7 : f32 to vector<16x400xf32>
    %9 = arith.maximumf %7, %8 : vector<16x400xf32>
    %c0_8 = arith.constant 0 : index
    %c0_9 = arith.constant 0 : index
    %10 = vector.load %arg5[%c0_8, %c0_9] : memref<400x32xf32, #tpu.memory_space<vmem>>, vector<400x32xf32>
    %cst_10 = arith.constant dense<0.000000e+00> : vector<16x32xf32>
    %11 = tpu.matmul %9, %10, %cst_10 {dimension_numbers = #tpu.dot_dimension_numbers<[1], [0], [0], [1], [0, 0, 1, 1], [], []>} : vector<16x400xf32>, vector<400x32xf32>, vector<16x32xf32> -> vector<16x32xf32>
    %c0_11 = arith.constant 0 : index
    %c0_12 = arith.constant 0 : index
    %12 = vector.load %arg6[%c0_11, %c0_12] : memref<1x32xf32, #tpu.memory_space<vmem>>, vector<1x32xf32>
    %13 = vector.broadcast %12 : vector<1x32xf32> to vector<16x32xf32>
    %14 = arith.addf %11, %13 : vector<16x32xf32>
    %c0_13 = arith.constant 0 : index
    %c0_14 = arith.constant 0 : index
    %15 = vector.load %arg12[%c0_13, %c0_14] : memref<16x32xf32, #tpu.memory_space<vmem>>, vector<16x32xf32>
    tpu.vector_store %arg12[%c0_13, %c0_14], %14 {strides = array<i32>} : memref<16x32xf32, #tpu.memory_space<vmem>>, vector<16x32xf32>,
    %cst_15 = arith.constant 5.000000e-01 : f32
    %16 = vector.broadcast %cst_15 : f32 to vector<16x32xf32>
    %17 = arith.mulf %16, %14 : vector<16x32xf32>
    %18 = math.exp %17 : vector<16x32xf32>
    %19 = arith.mulf %1, %18 : vector<16x32xf32>
    %cst_16 = arith.constant dense<0.000000e+00> : vector<16xf32>
    %20 = vector.multi_reduction <add>, %14, %cst_16 [1] : vector<16x32xf32> to vector<16xf32>
    %21 = vector.shape_cast %20 : vector<16xf32> to vector<16x1xf32>
    %cst_17 = arith.constant 5.000000e-01 : f32
    %22 = vector.broadcast %cst_17 : f32 to vector<16x1xf32>
    %23 = arith.mulf %22, %21 : vector<16x1xf32>
    %24 = arith.mulf %19, %1 : vector<16x32xf32>
    %cst_18 = arith.constant dense<0.000000e+00> : vector<16xf32>
    %25 = vector.multi_reduction <add>, %24, %cst_18 [1] : vector<16x32xf32> to vector<16xf32>
    %26 = vector.shape_cast %25 : vector<16xf32> to vector<16x1xf32>
    %cst_19 = arith.constant 58.8120651 : f32
    %27 = vector.broadcast %cst_19 : f32 to vector<16x1xf32>
    %28 = arith.addf %27, %23 : vector<16x1xf32>
    %29 = arith.addf %28, %26 : vector<16x1xf32>
    %cst_20 = arith.constant -5.000000e-01 : f32
    %30 = vector.broadcast %cst_20 : f32 to vector<16x1xf32>
    %31 = arith.mulf %30, %29 : vector<16x1xf32>
    %c0_21 = arith.constant 0 : index
    %c0_22 = arith.constant 0 : index
    %32 = vector.load %arg13[%c0_21, %c0_22] : memref<16x1xf32, #tpu.memory_space<vmem>>, vector<16x1xf32>
    tpu.vector_store %arg13[%c0_21, %c0_22], %31 {strides = array<i32>} : memref<16x1xf32, #tpu.memory_space<vmem>>, vector<16x1xf32>,
    %c0_23 = arith.constant 0 : index
    %c0_24 = arith.constant 0 : index
    %33 = vector.load %arg7[%c0_23, %c0_24] : memref<32x400xf32, #tpu.memory_space<vmem>>, vector<32x400xf32>
    %cst_25 = arith.constant dense<0.000000e+00> : vector<16x400xf32>
    %34 = tpu.matmul %19, %33, %cst_25 {dimension_numbers = #tpu.dot_dimension_numbers<[1], [0], [0], [1], [0, 0, 1, 1], [], []>} : vector<16x32xf32>, vector<32x400xf32>, vector<16x400xf32> -> vector<16x400xf32>
    %c0_26 = arith.constant 0 : index
    %c0_27 = arith.constant 0 : index
    %35 = vector.load %arg8[%c0_26, %c0_27] : memref<1x400xf32, #tpu.memory_space<vmem>>, vector<1x400xf32>
    %36 = vector.broadcast %35 : vector<1x400xf32> to vector<16x400xf32>
    %37 = arith.addf %34, %36 : vector<16x400xf32>
    %cst_28 = arith.constant 0.000000e+00 : f32
    %38 = vector.broadcast %cst_28 : f32 to vector<16x400xf32>
    %39 = arith.maximumf %37, %38 : vector<16x400xf32>
    %40 = arith.truncf %39 : vector<16x400xf32> to vector<16x400xbf16>
    %c0_29 = arith.constant 0 : index
    %c0_30 = arith.constant 0 : index
    %41 = vector.load %arg9[%c0_29, %c0_30] : memref<400x256xbf16, #tpu.memory_space<vmem>>, vector<400x256xbf16>
    %cst_31 = arith.constant dense<0.000000e+00> : vector<16x256xf32>
    %42 = tpu.matmul %40, %41, %cst_31 {dimension_numbers = #tpu.dot_dimension_numbers<[1], [0], [0], [1], [0, 0, 1, 1], [], []>} : vector<16x400xbf16>, vector<400x256xbf16>, vector<16x256xf32> -> vector<16x256xf32>
    %c0_32 = arith.constant 0 : index
    %c0_33 = arith.constant 0 : index
    %43 = vector.load %arg10[%c0_32, %c0_33] : memref<1x256xf32, #tpu.memory_space<vmem>>, vector<1x256xf32>
    %44 = vector.broadcast %43 : vector<1x256xf32> to vector<16x256xf32>
    %45 = arith.addf %42, %44 : vector<16x256xf32>
    %c0_34 = arith.constant 0 : index
    %c0_35 = arith.constant 0 : index
    %46 = vector.load %arg11[%c0_34, %c0_35] : memref<16x256xf32, #tpu.memory_space<vmem>>, vector<16x256xf32>
    tpu.vector_store %arg11[%c0_34, %c0_35], %45 {strides = array<i32>} : memref<16x256xf32, #tpu.memory_space<vmem>>, vector<16x256xf32>,
    return
  }
  func.func @transform_0(%arg0: i32) -> (i32, i32) {
    %c0_i32 = arith.constant 0 : i32
    %c0_i32_0 = arith.constant 0 : i32
    return %arg0, %c0_i32 : i32, i32
  }
  func.func @transform_1(%arg0: i32) -> (i32, i32) {
    %c0_i32 = arith.constant 0 : i32
    %c0_i32_0 = arith.constant 0 : i32
    return %arg0, %c0_i32 : i32, i32
  }
  func.func @transform_2(%arg0: i32) -> (i32, i32) {
    %c0_i32 = arith.constant 0 : i32
    %c0_i32_0 = arith.constant 0 : i32
    %c0_i32_1 = arith.constant 0 : i32
    return %c0_i32, %c0_i32_0 : i32, i32
  }
  func.func @transform_3(%arg0: i32) -> (i32, i32) {
    %c0_i32 = arith.constant 0 : i32
    %c0_i32_0 = arith.constant 0 : i32
    %c0_i32_1 = arith.constant 0 : i32
    return %c0_i32, %c0_i32_0 : i32, i32
  }
  func.func @transform_4(%arg0: i32) -> (i32, i32) {
    %c0_i32 = arith.constant 0 : i32
    %c0_i32_0 = arith.constant 0 : i32
    %c0_i32_1 = arith.constant 0 : i32
    return %c0_i32, %c0_i32_0 : i32, i32
  }
  func.func @transform_5(%arg0: i32) -> (i32, i32) {
    %c0_i32 = arith.constant 0 : i32
    %c0_i32_0 = arith.constant 0 : i32
    %c0_i32_1 = arith.constant 0 : i32
    return %c0_i32, %c0_i32_0 : i32, i32
  }
  func.func @transform_6(%arg0: i32) -> (i32, i32) {
    %c0_i32 = arith.constant 0 : i32
    %c0_i32_0 = arith.constant 0 : i32
    %c0_i32_1 = arith.constant 0 : i32
    return %c0_i32, %c0_i32_0 : i32, i32
  }
  func.func @transform_7(%arg0: i32) -> (i32, i32) {
    %c0_i32 = arith.constant 0 : i32
    %c0_i32_0 = arith.constant 0 : i32
    %c0_i32_1 = arith.constant 0 : i32
    return %c0_i32, %c0_i32_0 : i32, i32
  }
  func.func @transform_8(%arg0: i32) -> (i32, i32) {
    %c0_i32 = arith.constant 0 : i32
    %c0_i32_0 = arith.constant 0 : i32
    %c0_i32_1 = arith.constant 0 : i32
    return %c0_i32, %c0_i32_0 : i32, i32
  }
  func.func @transform_9(%arg0: i32) -> (i32, i32) {
    %c0_i32 = arith.constant 0 : i32
    %c0_i32_0 = arith.constant 0 : i32
    %c0_i32_1 = arith.constant 0 : i32
    return %c0_i32, %c0_i32_0 : i32, i32
  }
  func.func @transform_10(%arg0: i32) -> (i32, i32) {
    %c0_i32 = arith.constant 0 : i32
    %c0_i32_0 = arith.constant 0 : i32
    return %arg0, %c0_i32 : i32, i32
  }
  func.func @transform_11(%arg0: i32) -> (i32, i32) {
    %c0_i32 = arith.constant 0 : i32
    %c0_i32_0 = arith.constant 0 : i32
    return %arg0, %c0_i32 : i32, i32
  }
  func.func @transform_12(%arg0: i32) -> (i32, i32) {
    %c0_i32 = arith.constant 0 : i32
    %c0_i32_0 = arith.constant 0 : i32
    return %arg0, %c0_i32 : i32, i32
  }
}

</mosaic_0001>

<bundles_post_ra>
// kernel: blackattack_forward.1
= control target key start
LH: loop header
LB: loop body
LE: loop exit
PB: predicated region body
PF: predicated region fallthrough
CT: control target
= control target key end

     0   :  { %s2600_s0 = inlined_call_operand.vmem [shape: f32[16,256], index: 0, kind: input, shape index: {}]   ;;  %s2601_s1 = inlined_call_operand.vmem [shape: f32[16,32], index: 1, kind: input, shape index: {}]   ;;  %s2602_s2 = inlined_call_operand.vmem [shape: bf16[256,400], index: 2, kind: input, shape index: {}]   ;;  %s2603_s3 = inlined_call_operand.vmem [shape: f32[1,400], index: 3, kind: input, shape index: {}]   ;;  %s2604_s4 = inlined_call_operand.vmem [shape: f32[400,32], index: 4, kind: input, shape index: {}]   ;;  %s2605_s5 = inlined_call_operand.vmem [shape: f32[1,32], index: 5, kind: input, shape index: {}]   ;;  %s2606_s6 = inlined_call_operand.vmem [shape: f32[32,400], index: 6, kind: input, shape index: {}]   ;;  %s2607_s7 = inlined_call_operand.vmem [shape: f32[1,400], index: 7, kind: input, shape index: {}]   ;;  %s2608_s8 = inlined_call_operand.vmem [shape: bf16[400,256], index: 8, kind: input, shape index: {}]   ;;  %s2609_s9 = inlined_call_operand.vmem [shape: f32[1,256], index: 9, kind: input, shape index: {}]   ;;  %s2610_s10 = inlined_call_operand.vmem [shape: f32[16,256], index: 10, kind: output, shape index: {0}]   ;;  %s2611_s11 = inlined_call_operand.hbm [shape: f32[16,32], index: 11, kind: output, shape index: {1}]   ;;  %s2612_s12 = inlined_call_operand.vmem [shape: f32[16,1], index: 12, kind: output, shape index: {2}]  }
   0x1   :  { %v1685_v0 = vld [vmem:[%s2602_s2 + $0x4] ss:$16 sps:$4 sm:$0xff]   ;;  %v1687_v1 = vld [vmem:[%s2602_s2 + $0xc] ss:$16 sps:$4 sm:$0xff]   ;;  %v1689_v2 = vld [vmem:[%s2602_s2] ss:$16 sps:$4 sm:$0xff]  }
   0x2   :  { %454 = vmatprep.subr.bf16.mxu0 %v1685_v0  ;;  %v1690_v3 = vld [vmem:[%s2602_s2 + $0x8] ss:$16 sps:$4 sm:$0xff]   ;;  %497 = vmatprep.subr.bf16.mxu1 %v1687_v1  ;;  %v1691_v4 = vld [vmem:[%s2602_s2 + $0x24] ss:$16 sps:$4 sm:$0xff]   ;;  %v1693_v5 = vld [vmem:[%s2602_s2 + $0x2c] ss:$16 sps:$4 sm:$0xff]  }
   0x3   :  { %455 = vmatpush1.bf16.msra.mxu0 %v1689_v2  ;;  %498 = vmatpush1.bf16.msra.mxu1 %v1690_v3  ;;  %v1695_v6 = vld [vmem:[%s2602_s2 + $0x20] ss:$16 sps:$4 sm:$0xff]   ;;  %v1696_v7 = vld [vmem:[%s2602_s2 + $0x28] ss:$16 sps:$4 sm:$0xff]   ;;  %v1697_v8 = vld [vmem:[%s2602_s2 + $0x44] ss:$16 sps:$4 sm:$0xff]  }
   0x4   :  { %456 = vmatprep.subr.bf16.mxu0 %v1691_v4  ;;  %499 = vmatprep.subr.bf16.mxu1 %v1693_v5  ;;  %v1699_v9 = vld [vmem:[%s2602_s2 + $0x4c] ss:$16 sps:$4 sm:$0xff]   ;;  %v1701_v10 = vld [vmem:[%s2602_s2 + $0x40] ss:$16 sps:$4 sm:$0xff]   ;;  %v1702_v11 = vld [vmem:[%s2602_s2 + $0x48] ss:$16 sps:$4 sm:$0xff]  }
   0x5   :  { %v1703_v12 = vld [vmem:[%s2602_s2 + $0x64] ss:$16 sps:$4 sm:$0xff]   ;;  %v1705_v13 = vld [vmem:[%s2602_s2 + $0x6c] ss:$16 sps:$4 sm:$0xff]   ;;  %v1707_v14 = vld [vmem:[%s2602_s2 + $0x60] ss:$16 sps:$4 sm:$0xff]  }
   0x6   :  { %v1708_v15 = vld [vmem:[%s2602_s2 + $0x68] ss:$16 sps:$4 sm:$0xff]   ;;  %v1709_v16 = vld [vmem:[%s2602_s2 + $0x84] ss:$16 sps:$4 sm:$0xff]   ;;  %v1711_v17 = vld [vmem:[%s2602_s2 + $0x8c] ss:$16 sps:$4 sm:$0xff]  }
   0x7   :  { %457 = vmatpush1.bf16.msra.mxu0 %v1695_v6  ;;  %500 = vmatpush1.bf16.msra.mxu1 %v1696_v7  ;;  %v1713_v18 = vld [vmem:[%s2602_s2 + $0x80] ss:$16 sps:$4 sm:$0xff]   ;;  %v1714_v19 = vld [vmem:[%s2602_s2 + $0x88] ss:$16 sps:$4 sm:$0xff]   ;;  %v1715_v20 = vld [vmem:[%s2602_s2 + $0xa4] ss:$16 sps:$4 sm:$0xff]  }
   0x8   :  { %458 = vmatprep.subr.bf16.mxu0 %v1697_v8  ;;  %501 = vmatprep.subr.bf16.mxu1 %v1699_v9  ;;  %v1717_v21 = vld [vmem:[%s2602_s2 + $0xac] ss:$16 sps:$4 sm:$0xff]   ;;  %v1719_v22 = vld [vmem:[%s2602_s2 + $0xa0] ss:$16 sps:$4 sm:$0xff]   ;;  %v1720_v23 = vld [vmem:[%s2602_s2 + $0xa8] ss:$16 sps:$4 sm:$0xff]  }
   0x9   :  { %v1721_v24 = vld [vmem:[%s2602_s2 + $0xc4] ss:$16 sps:$4 sm:$0xff]   ;;  %v1723_v25 = vld [vmem:[%s2602_s2 + $0xcc] ss:$16 sps:$4 sm:$0xff]   ;;  %v1725_v26 = vld [vmem:[%s2602_s2 + $0xc0] ss:$16 sps:$4 sm:$0xff]  }
   0xa   :  { %v1726_v27 = vld [vmem:[%s2602_s2 + $0xc8] ss:$16 sps:$4 sm:$0xff]   ;;  %v1727_v28 = vld [vmem:[%s2602_s2 + $0xe4] ss:$16 sps:$4 sm:$0xff]   ;;  %v1729_v29 = vld [vmem:[%s2602_s2 + $0xec] ss:$16 sps:$4 sm:$0xff]  }
   0xb   :  { %459 = vmatpush1.bf16.msra.mxu0 %v1701_v10  ;;  %502 = vmatpush1.bf16.msra.mxu1 %v1702_v11  ;;  %v1731_v30 = vld [vmem:[%s2602_s2 + $0xe0] ss:$16 sps:$4 sm:$0xff]   ;;  %v1732_v31 = vld [vmem:[%s2602_s2 + $0xe8] ss:$16 sps:$4 sm:$0xff]   ;;  %v1733_v32 = vld [vmem:[%s2602_s2 + $0x104] ss:$16 sps:$4 sm:$0xff]  }
   0xc   :  { %460 = vmatprep.subr.bf16.mxu0 %v1703_v12  ;;  %503 = vmatprep.subr.bf16.mxu1 %v1705_v13  ;;  %v1735_v33 = vld [vmem:[%s2602_s2 + $0x10c] ss:$16 sps:$4 sm:$0xff]   ;;  %v1737_v34 = vld [vmem:[%s2602_s2 + $0x100] ss:$16 sps:$4 sm:$0xff]   ;;  %v1738_v35 = vld [vmem:[%s2602_s2 + $0x108] ss:$16 sps:$4 sm:$0xff]  }
   0xd   :  { %v1739_v36 = vld [vmem:[%s2602_s2 + $0x124] ss:$16 sps:$4 sm:$0xff]   ;;  %v1741_v37 = vld [vmem:[%s2602_s2 + $0x12c] ss:$16 sps:$4 sm:$0xff]   ;;  %v1743_v38 = vld [vmem:[%s2602_s2 + $0x120] ss:$16 sps:$4 sm:$0xff]  }
   0xe   :  { %v1744_v39 = vld [vmem:[%s2602_s2 + $0x128] ss:$16 sps:$4 sm:$0xff]   ;;  %v1745_v40 = vld [vmem:[%s2602_s2 + $0x144] ss:$16 sps:$4 sm:$0xff]   ;;  %v1747_v41 = vld [vmem:[%s2602_s2 + $0x14c] ss:$16 sps:$4 sm:$0xff]  }
   0xf   :  { %461 = vmatpush1.bf16.msra.mxu0 %v1707_v14  ;;  %504 = vmatpush1.bf16.msra.mxu1 %v1708_v15  ;;  %v1749_v42 = vld [vmem:[%s2602_s2 + $0x140] ss:$16 sps:$4 sm:$0xff]   ;;  %v1750_v43 = vld [vmem:[%s2602_s2 + $0x148] ss:$16 sps:$4 sm:$0xff]   ;;  %v1751_v44 = vld [vmem:[%s2602_s2 + $0x164] ss:$16 sps:$4 sm:$0xff]  }
  0x10   :  { %462 = vmatprep.subr.bf16.mxu0 %v1709_v16  ;;  %505 = vmatprep.subr.bf16.mxu1 %v1711_v17  ;;  %v1753_v45 = vld [vmem:[%s2602_s2 + $0x16c] ss:$16 sps:$4 sm:$0xff]   ;;  %v1755_v48 = vld [vmem:[%s2602_s2 + $0x160] ss:$16 sps:$4 sm:$0xff]   ;;  %v1756_v49 = vld [vmem:[%s2602_s2 + $0x168] ss:$16 sps:$4 sm:$0xff]  }
  0x11   :  { %v41_v46 = vld [vmem:[%s2600_s0 + $0x8] sm:$0xff]  ;;  %v43_v47 = vld [vmem:[%s2600_s0 + $0x18] sm:$0xff]  ;;  %v1757_v51 = vld [vmem:[%s2602_s2 + $0x184] ss:$16 sps:$4 sm:$0xff]  }
  0x12   :  { %v47_v50 = vpack.c.bf16 %v43_v47, %v41_v46  ;;  %v1759_v52 = vld [vmem:[%s2602_s2 + $0x18c] ss:$16 sps:$4 sm:$0xff]   ;;  %v1761_v53 = vld [vmem:[%s2602_s2 + $0x180] ss:$16 sps:$4 sm:$0xff]   ;;  %v1762_v54 = vld [vmem:[%s2602_s2 + $0x188] ss:$16 sps:$4 sm:$0xff]  }
  0x13   :  { %463 = vmatpush1.bf16.msra.mxu0 %v1713_v18  ;;  %506 = vmatpush1.bf16.msra.mxu1 %v1714_v19  ;;  %v1763_v55 = vld [vmem:[%s2602_s2 + $0x1a4] ss:$16 sps:$4 sm:$0xff]   ;;  %v1765_v56 = vld [vmem:[%s2602_s2 + $0x1ac] ss:$16 sps:$4 sm:$0xff]   ;;  %v1767_v57 = vld [vmem:[%s2602_s2 + $0x1a0] ss:$16 sps:$4 sm:$0xff]  }
  0x14   :  { %464 = vmatprep.subr.bf16.mxu0 %v1715_v20  ;;  %507 = vmatprep.subr.bf16.mxu1 %v1717_v21  ;;  %v1768_v58 = vld [vmem:[%s2602_s2 + $0x1a8] ss:$16 sps:$4 sm:$0xff]   ;;  %v1769_v59 = vld [vmem:[%s2602_s2 + $0x1c4] ss:$16 sps:$4 sm:$0xff]   ;;  %v1771_v60 = vld [vmem:[%s2602_s2 + $0x1cc] ss:$16 sps:$4 sm:$0xff]  }
  0x15   :  { %486 = vmatprep.mubr.bf16.mxu0 %v47_v50  ;;  %529 = vmatprep.mubr.bf16.mxu1 %v47_v50  ;;  %v1773_v61 = vld [vmem:[%s2602_s2 + $0x1c0] ss:$16 sps:$4 sm:$0xff]   ;;  %v1774_v62 = vld [vmem:[%s2602_s2 + $0x1c8] ss:$16 sps:$4 sm:$0xff]   ;;  %v1775_v63 = vld [vmem:[%s2602_s2 + $0x1e4] ss:$16 sps:$4 sm:$0xff]  }
  0x16   :  { %v1777_v0 = vld [vmem:[%s2602_s2 + $0x1ec] ss:$16 sps:$4 sm:$0xff]   ;;  %v564_v1 = vld [vmem:[%s2604_s4 + $0x80] sm:$0xff]  ;;  %v1780_v4 = vld [vmem:[%s2602_s2 + $0x1e8] ss:$16 sps:$4 sm:$0xff]  }
  0x17   :  { %465 = vmatpush1.bf16.msra.mxu0 %v1719_v22  ;;  %508 = vmatpush1.bf16.msra.mxu1 %v1720_v23  ;;  %v565_v2 = vld [vmem:[%s2604_s4 + $0x88] sm:$0xff]  ;;  %v1779_v3 = vld [vmem:[%s2602_s2 + $0x1e0] ss:$16 sps:$4 sm:$0xff]   ;;  %v567_v12 = vld [vmem:[%s2604_s4 + $0x98] sm:$0xff]  ;;  %v1884_v23 = vmov 0.0|0.0  }
  0x18   :  { %466 = vmatprep.subr.bf16.mxu0 %v1721_v24  ;;  %509 = vmatprep.subr.bf16.mxu1 %v1723_v25  ;;  %v40_v5 = vld [vmem:[%s2600_s0] sm:$0xff]  ;;  %v42_v6 = vld [vmem:[%s2600_s0 + $0x10] sm:$0xff]  ;;  %v581_v8 = vld [vmem:[%s2604_s4 + $0x108] sm:$0xff]  ;;  %v1597_v13 = vpack.c.bf16 %v565_v2, %v564_v1 }
  0x19   :  { %v580_v7 = vld [vmem:[%s2604_s4 + $0x100] sm:$0xff]  ;;  %v549_v10 = vld [vmem:[%s2604_s4 + $0x8] sm:$0xff]  ;;  %v566_v11 = vld [vmem:[%s2604_s4 + $0x90] sm:$0xff]  ;;  %v46_v14 = vpack.c.bf16 %v42_v6, %v40_v5 }
  0x1a   :  { %v548_v9 = vld [vmem:[%s2604_s4] sm:$0xff]  ;;  %v582_v15 = vld [vmem:[%s2604_s4 + $0x110] sm:$0xff]  ;;  %v583_v16 = vld [vmem:[%s2604_s4 + $0x118] sm:$0xff]  ;;  %v1630_v19 = vpack.c.bf16 %v581_v8, %v580_v7  ;;  %v1601_v24 = vpack.c.bf16 %v567_v12, %v566_v11 }
  0x1b   :  { %467 = vmatpush1.bf16.msra.mxu0 %v1725_v26  ;;  %510 = vmatpush1.bf16.msra.mxu1 %v1726_v27  ;;  %v550_v17 = vld [vmem:[%s2604_s4 + $0x10] sm:$0xff]  ;;  %v551_v18 = vld [vmem:[%s2604_s4 + $0x18] sm:$0xff]  ;;  %v1599_v20 = vpack.c.bf16 %v549_v10, %v548_v9  ;;  %v568_v21 = vld [vmem:[%s2604_s4 + $0xa0] sm:$0xff] }
  0x1c   :  { %468 = vmatprep.subr.bf16.mxu0 %v1727_v28  ;;  %511 = vmatprep.subr.bf16.mxu1 %v1729_v29  ;;  %v569_v22 = vld [vmem:[%s2604_s4 + $0xa8] sm:$0xff]  ;;  %v584_v25 = vld [vmem:[%s2604_s4 + $0x120] sm:$0xff]  ;;  %v1633_v29 = vpack.c.bf16 %v583_v16, %v582_v15 }
  0x1d   :  { %v585_v26 = vld [vmem:[%s2604_s4 + $0x128] sm:$0xff]  ;;  %v552_v27 = vld [vmem:[%s2604_s4 + $0x20] sm:$0xff] }
  0x1e   :  { %v553_v28 = vld [vmem:[%s2604_s4 + $0x28] sm:$0xff] }
  0x1f   :  { %469 = vmatpush1.bf16.msra.mxu0 %v1731_v30  ;;  %512 = vmatpush1.bf16.msra.mxu1 %v1732_v31  ;;  %v1603_v30 = vpack.c.bf16 %v551_v18, %v550_v17  ;;  %v570_v31 = vld [vmem:[%s2604_s4 + $0xb0] sm:$0xff] }
  0x20   :  { %470 = vmatprep.subr.bf16.mxu0 %v1733_v32  ;;  %513 = vmatprep.subr.bf16.mxu1 %v1735_v33  ;;  %v571_v32 = vld [vmem:[%s2604_s4 + $0xb8] sm:$0xff]  ;;  %v1605_v33 = vpack.c.bf16 %v569_v22, %v568_v21 }
  0x23   :  { %471 = vmatpush1.bf16.msra.mxu0 %v1737_v34  ;;  %514 = vmatpush1.bf16.msra.mxu1 %v1738_v35  ;;  %v586_v34 = vld [vmem:[%s2604_s4 + $0x130] sm:$0xff]  ;;  %v587_v35 = vld [vmem:[%s2604_s4 + $0x138] sm:$0xff] }
  0x24   :  { %472 = vmatprep.subr.bf16.mxu0 %v1739_v36  ;;  %515 = vmatprep.subr.bf16.mxu1 %v1741_v37  ;;  %v554_v36 = vld [vmem:[%s2604_s4 + $0x30] sm:$0xff]  ;;  %v555_v37 = vld [vmem:[%s2604_s4 + $0x38] sm:$0xff] }
  0x27   :  { %473 = vmatpush1.bf16.msra.mxu0 %v1743_v38  ;;  %516 = vmatpush1.bf16.msra.mxu1 %v1744_v39  ;;  %v1636_v38 = vpack.c.bf16 %v585_v26, %v584_v25  ;;  %v1607_v39 = vpack.c.bf16 %v553_v28, %v552_v27 }
  0x28   :  { %474 = vmatprep.subr.bf16.mxu0 %v1745_v40  ;;  %517 = vmatprep.subr.bf16.mxu1 %v1747_v41  ;;  %v572_v40 = vld [vmem:[%s2604_s4 + $0xc0] sm:$0xff]  ;;  %v1609_v41 = vpack.c.bf16 %v571_v32, %v570_v31 }
  0x2b   :  { %475 = vmatpush1.bf16.msra.mxu0 %v1749_v42  ;;  %518 = vmatpush1.bf16.msra.mxu1 %v1750_v43  ;;  %v573_v42 = vld [vmem:[%s2604_s4 + $0xc8] sm:$0xff] }
  0x2c   :  { %476 = vmatprep.subr.bf16.mxu0 %v1751_v44  ;;  %519 = vmatprep.subr.bf16.mxu1 %v1753_v45 }
  0x2f   :  { %477 = vmatpush1.bf16.msra.mxu0 %v1755_v48  ;;  %520 = vmatpush1.bf16.msra.mxu1 %v1756_v49 }
  0x30   :  { %478 = vmatprep.subr.bf16.mxu0 %v1757_v51  ;;  %521 = vmatprep.subr.bf16.mxu1 %v1759_v52 }
  0x33   :  { %479 = vmatpush1.bf16.msra.mxu0 %v1761_v53  ;;  %522 = vmatpush1.bf16.msra.mxu1 %v1762_v54 }
  0x34   :  { %480 = vmatprep.subr.bf16.mxu0 %v1763_v55  ;;  %523 = vmatprep.subr.bf16.mxu1 %v1765_v56 }
  0x37   :  { %481 = vmatpush1.bf16.msra.mxu0 %v1767_v57  ;;  %524 = vmatpush1.bf16.msra.mxu1 %v1768_v58 }
  0x38   :  { %482 = vmatprep.subr.bf16.mxu0 %v1769_v59  ;;  %525 = vmatprep.subr.bf16.mxu1 %v1771_v60 }
  0x3b   :  { %483 = vmatpush1.bf16.msra.mxu0 %v1773_v61  ;;  %526 = vmatpush1.bf16.msra.mxu1 %v1774_v62 }
  0x3c   :  { %484 = vmatprep.subr.bf16.mxu0 %v1775_v63  ;;  %527 = vmatprep.subr.bf16.mxu1 %v1777_v0 }
  0x3f   :  { %485 = vmatpush1.bf16.msra.mxu0 %v1779_v3  ;;  %528 = vmatpush1.bf16.msra.mxu1 %v1780_v4 }
  0x40   :  { %1629 = vmatprep.subr.bf16.mxu1 %v1884_v23  ;;  %1598 = vmatprep.subr.bf16.mxu0 %v1597_v13 }
  0x42   :  { %487 = vmatmul.mubr.bf16.vlgmr.msra.gmra.mrb[0].mxu0 %v46_v14  ;;  %530 = vmatmul.mubr.bf16.vlgmr.msra.gmra.mrb[0].mxu1 %v46_v14 }
  0x43   :  { %1631 = vmatpush1.bf16.msra.mxu1 %v1630_v19  ;;  %1600 = vmatpush3.bf16.msra.mxu0 %v1599_v20 }
  0x44   :  { %1632 = vmatprep.subr.bf16.mxu1 %v1884_v23  ;;  %1602 = vmatprep.subr.bf16.mxu0 %v1601_v24 }
  0x47   :  { %1634 = vmatpush1.bf16.msra.mxu1 %v1633_v29  ;;  %1604 = vmatpush3.bf16.msra.mxu0 %v1603_v30 }
  0x48   :  { %1635 = vmatprep.subr.bf16.mxu1 %v1884_v23  ;;  %1606 = vmatprep.subr.bf16.mxu0 %v1605_v33 }
  0x49   :  { %18 = vsyncpa [#allocation3], 0  ;;  %v1639_v43 = vpack.c.bf16 %v587_v35, %v586_v34  ;;  %v1611_v44 = vpack.c.bf16 %v555_v37, %v554_v36  ;;  %v588_v45 = vld [vmem:[%s2604_s4 + $0x140] sm:$0xff]  ;;  %v589_v46 = vld [vmem:[%s2604_s4 + $0x148] sm:$0xff]  ;;  %v1613_v47 = vpack.c.bf16 %v573_v42, %v572_v40  ;;  %v114_v18 = vlaneseq }
  0x4a   :  { %v556_v48 = vld [vmem:[%s2604_s4 + $0x40] sm:$0xff]  ;;  %v557_v49 = vld [vmem:[%s2604_s4 + $0x48] sm:$0xff]  ;;  %v574_v50 = vld [vmem:[%s2604_s4 + $0xd0] sm:$0xff]  ;;  %v1642_v52 = vpack.c.bf16 %v589_v46, %v588_v45  ;;  %vm605_vm0 = vcmask 130048   ;;  %vm762_vm1 = vcmask 261120   ;;  %vm795_vm2 = vcmask 7168  }
  0x4b   :  { %1637 = vmatpush1.bf16.msra.mxu1 %v1636_v38  ;;  %1608 = vmatpush3.bf16.msra.mxu0 %v1607_v39  ;;  %v575_v51 = vld [vmem:[%s2604_s4 + $0xd8] sm:$0xff]  ;;  %v1615_v53 = vpack.c.bf16 %v557_v49, %v556_v48  ;;  %v590_v54 = vld [vmem:[%s2604_s4 + $0x150] sm:$0xff]  ;;  %v576_v59 = vld [vmem:[%s2604_s4 + $0xe0] sm:$0xff]  ;;  %v2317_v19 = vshrl.u32 %v114_v18, 7 }
  0x4c   :  { %1638 = vmatprep.subr.bf16.mxu1 %v1884_v23  ;;  %1610 = vmatprep.subr.bf16.mxu0 %v1609_v41  ;;  %v591_v55 = vld [vmem:[%s2604_s4 + $0x158] sm:$0xff]  ;;  %v1617_v56 = vpack.c.bf16 %v575_v51, %v574_v50  ;;  %v558_v57 = vld [vmem:[%s2604_s4 + $0x50] sm:$0xff]  ;;  %v577_v60 = vld [vmem:[%s2604_s4 + $0xe8] sm:$0xff] }
  0x4d   :  { %v559_v58 = vld [vmem:[%s2604_s4 + $0x58] sm:$0xff]  ;;  %v1645_v61 = vpack.c.bf16 %v591_v55, %v590_v54  ;;  %v592_v63 = vld [vmem:[%s2604_s4 + $0x160] sm:$0xff]  ;;  %v593_v0 = vld [vmem:[%s2604_s4 + $0x168] sm:$0xff]  ;;  %v1621_v1 = vpack.c.bf16 %v577_v60, %v576_v59  ;;  %v2320_v20 = vsub.s32 0, %v2317_v19  ;;  %v124_v21 = vsub.s32 2, %v2317_v19 }
  0x4e   :  { %v1619_v62 = vpack.c.bf16 %v559_v58, %v558_v57  ;;  %v1648_v2 = vpack.c.bf16 %v593_v0, %v592_v63  ;;  %v560_v3 = vld [vmem:[%s2604_s4 + $0x60] sm:$0xff]  ;;  %v561_v4 = vld [vmem:[%s2604_s4 + $0x68] sm:$0xff]  ;;  %v594_v5 = vld [vmem:[%s2604_s4 + $0x170] sm:$0xff]  ;;  %v128_v24 = vsub.s32 3, %v2317_v19 }
  0x4f   :  { %1640 = vmatpush1.bf16.msra.mxu1 %v1639_v43  ;;  %1612 = vmatpush3.bf16.msra.mxu0 %v1611_v44  ;;  %v1623_v6 = vpack.c.bf16 %v561_v4, %v560_v3  ;;  %v595_v7 = vld [vmem:[%s2604_s4 + $0x178] sm:$0xff]  ;;  %v578_v9 = vld [vmem:[%s2604_s4 + $0xf0] sm:$0xff]  ;;  %v596_v14 = vld [vmem:[%s2604_s4 + $0x180] sm:$0xff]  ;;  %v1885_v4 = vmov 0.0  }
  0x50   :  { %1641 = vmatprep.subr.bf16.mxu1 %v1884_v23  ;;  %1614 = vmatprep.subr.bf16.mxu0 %v1613_v47  ;;  %v1651_v8 = vpack.c.bf16 %v595_v7, %v594_v5  ;;  %v579_v10 = vld [vmem:[%s2604_s4 + $0xf8] sm:$0xff]  ;;  %v562_v12 = vld [vmem:[%s2604_s4 + $0x70] sm:$0xff]  ;;  %v597_v16 = vld [vmem:[%s2604_s4 + $0x188] sm:$0xff] }
  0x51   :  { %v1625_v11 = vpack.c.bf16 %v579_v10, %v578_v9  ;;  %v563_v13 = vld [vmem:[%s2604_s4 + $0x78] sm:$0xff]  ;;  %v1654_v17 = vpack.c.bf16 %v597_v16, %v596_v14  ;;  %v112_v22 = vld [vmem:[%s2603_s3] sm:$0xf]  ;;  %v803_v54 = vld [vmem:[%s2606_s6 + $0x28] sm:$0xff] }
  0x52   :  { %v1627_v15 = vpack.c.bf16 %v563_v13, %v562_v12  ;;  %v117_v25 = vrot.slane %v112_v22, %v2320_v20  ;;  %v125_v26 = vrot.slane %v112_v22, %v124_v21  ;;  %v129_v28 = vrot.slane %v112_v22, %v128_v24  ;;  %v802_v57 = vld [vmem:[%s2606_s6 + $0x20] sm:$0xff]  ;;  %v807_v59 = vld [vmem:[%s2606_s6 + $0x48] sm:$0xff] }
  0x53   :  { %1643 = vmatpush1.bf16.msra.mxu1 %v1642_v52  ;;  %1616 = vmatpush3.bf16.msra.mxu0 %v1615_v53  ;;  %v799_v53 = vld [vmem:[%s2606_s6 + $0x8] sm:$0xff]  ;;  %v810_v63 = vld [vmem:[%s2606_s6 + $0x60] sm:$0xff] }
  0x54   :  { %1644 = vmatprep.subr.bf16.mxu1 %v1884_v23  ;;  %1618 = vmatprep.subr.bf16.mxu0 %v1617_v56  ;;  %v1656_v55 = vpack.c.bf16 %v803_v54, %v799_v53  ;;  %v798_v56 = vld [vmem:[%s2606_s6] sm:$0xff]  ;;  %v811_v60 = vld [vmem:[%s2606_s6 + $0x68] sm:$0xff]  ;;  %v1784_v53 = vld [vmem:[%s2608_s8 + $0x10] ss:$8 sps:$4 sm:$0xff]  }
  0x55   :  { %v1658_v58 = vpack.c.bf16 %v802_v57, %v798_v56  ;;  %v1789_v54 = vld [vmem:[%s2608_s8 + $0x24] ss:$8 sps:$4 sm:$0xff]   ;;  %v1787_v56 = vld [vmem:[%s2608_s8 + $0x20] ss:$8 sps:$4 sm:$0xff]  }
  0x56   :  { %v1813_v57 = vld [vmem:[%s2608_s8 + $0x104] ss:$8 sps:$4 sm:$0xff]  }
  0x57   :  { %1646 = vmatpush1.bf16.msra.mxu1 %v1645_v61  ;;  %1620 = vmatpush3.bf16.msra.mxu0 %v1619_v62  ;;  %v1660_v61 = vpack.c.bf16 %v811_v60, %v807_v59  ;;  %v806_v62 = vld [vmem:[%s2606_s6 + $0x40] sm:$0xff]  ;;  %v1819_v59 = vld [vmem:[%s2608_s8 + $0x114] ss:$8 sps:$4 sm:$0xff]   ;;  %v1817_v60 = vld [vmem:[%s2608_s8 + $0x110] ss:$8 sps:$4 sm:$0xff]  }
  0x58   :  { %1647 = vmatprep.subr.bf16.mxu1 %v1884_v23  ;;  %1622 = vmatprep.subr.bf16.mxu0 %v1621_v1  ;;  %v1662_v0 = vpack.c.bf16 %v810_v63, %v806_v62  ;;  %v801_v1 = vld [vmem:[%s2606_s6 + $0x18] sm:$0xff]  ;;  %v1825_v62 = vld [vmem:[%s2608_s8 + $0x124] ss:$8 sps:$4 sm:$0xff]  }
  0x59   :  { %v1795_v63 = vld [vmem:[%s2608_s8 + $0x44] ss:$8 sps:$4 sm:$0xff]  }
  0x5b   :  { %1649 = vmatpush1.bf16.msra.mxu1 %v1648_v2  ;;  %1624 = vmatpush3.bf16.msra.mxu0 %v1623_v6  ;;  %v805_v2 = vld [vmem:[%s2606_s6 + $0x38] sm:$0xff] }
  0x5c   :  { %1650 = vmatprep.subr.bf16.mxu1 %v1884_v23  ;;  %1626 = vmatprep.subr.bf16.mxu0 %v1625_v11  ;;  %v1664_v3 = vpack.c.bf16 %v805_v2, %v801_v1  ;;  %v1793_v1 = vld [vmem:[%s2608_s8 + $0x40] ss:$8 sps:$4 sm:$0xff]   ;;  %v1831_v2 = vld [vmem:[%s2608_s8 + $0x134] ss:$8 sps:$4 sm:$0xff]  }
  0x5f   :  { %1652 = vmatpush1.bf16.msra.mxu1 %v1651_v8  ;;  %1628 = vmatpush3.bf16.msra.mxu0 %v1627_v15  ;;  %v1501_v8 = vld [vmem:[%s2605_s5] ss:$0 sm:$0xff] }
  0x60   :  { %1653 = vmatprep.subr.bf16.mxu1 %v1884_v23  ;;  %v2327_v23 = vsub.s32 1, %v2317_v19 }
  0x62   :  { %v121_v27 = vrot.slane %v112_v22, %v2327_v23 }
  0x63   :  { %1655 = vmatpush1.bf16.msra.mxu1 %v1654_v17 }
  0x64   :  { %1657 = vmatprep.subr.bf16.mxu1 %v1656_v55  ;;  %v1811_v55 = vld [vmem:[%s2608_s8 + $0x100] ss:$8 sps:$4 sm:$0xff]  }
 0x115   :  { %v488_v29 = vpop.f32.mrb[0].mxu0  ;;  %v531_v30 = vpop.f32.mrb[0].mxu1 }
 0x116   :  { %v489_v31 = vadd.f32 %v488_v29, %v117_v25  ;;  %v532_v32 = vadd.f32 %v531_v30, %v125_v26  ;;  %v490_v33 = vpop.f32.mrb[1].mxu0  ;;  %v533_v34 = vpop.f32.mrb[1].mxu1 }
 0x117   :  { %v491_v35 = vadd.f32 %v490_v33, %v121_v27  ;;  %v534_v36 = vadd.f32 %v533_v34, %v129_v28  ;;  %v492_v37 = vpop.f32.mrb[2].mxu0  ;;  %v535_v38 = vpop.f32.mrb[2].mxu1  ;;  %v44_v33 = vld [vmem:[%s2601_s1] sm:$0xff]  ;;  %v809_v34 = vld [vmem:[%s2606_s6 + $0x58] sm:$0xff] }
 0x118   :  { %v542_v39 = vmax.f32 %v532_v32, 0.0  ;;  %v494_v40 = vpop.f32.mrb[3].mxu0  ;;  %v536_v41 = vadd.f32 %v535_v38, %v125_v26  ;;  %v537_v42 = vpop.f32.mrb[3].mxu1  ;;  %v540_v47 = vmax.f32 %v489_v31, 0.0  ;;  %v493_v48 = vadd.f32 %v492_v37, %v117_v25  ;;  %v800_v31 = vld [vmem:[%s2606_s6 + $0x10] sm:$0xff] }
 0x119   :  { %v541_v43 = vmax.f32 %v491_v35, 0.0  ;;  %v543_v44 = vmax.f32 %v534_v36, 0.0  ;;  %v495_v45 = vadd.f32 %v494_v40, %v121_v27  ;;  %v538_v46 = vadd.f32 %v537_v42, %v129_v28  ;;  %v804_v32 = vld [vmem:[%s2606_s6 + $0x30] sm:$0xff]  ;;  %v813_v35 = vld [vmem:[%s2606_s6 + $0x78] sm:$0xff]  ;;  %v45_v42 = vld [vmem:[%s2601_s1 + $0x8] sm:$0xff] }
 0x11a   :  { %v546_v51 = vmax.f32 %v536_v41, 0.0  ;;  %v544_v52 = vmax.f32 %v493_v48, 0.0  ;;  %v1666_v37 = vpack.c.bf16 %v804_v32, %v800_v31  ;;  %v808_v40 = vld [vmem:[%s2606_s6 + $0x50] sm:$0xff]  ;;  %v1838_v31 = vld [vmem:[%s2608_s8 + $0xe0] ss:$8 sps:$4 sm:$0xff]  }
 0x11b   :  { %v545_v49 = vmax.f32 %v495_v45, 0.0  ;;  %v547_v50 = vmax.f32 %v538_v46, 0.0  ;;  %676 = vmatprep.mubr.f32.mxu0 %v541_v43  ;;  %1502 = vmatprep.mubr.msk.f32.mxu1 %vm605_vm0, %v543_v44  ;;  %v812_v41 = vld [vmem:[%s2606_s6 + $0x70] sm:$0xff] }
 0x11c   :  { %677 = vmatmul.mubr.f32.vlgmr.msra.gmra.mrb[4].mxu0 %v540_v47  ;;  %752 = vmatmul.mubr.f32.vlgmr.msra.gmra.mrb[4].mxu1 %v542_v39  ;;  %v1668_v39 = vpack.c.bf16 %v813_v35, %v809_v34  ;;  %v1670_v45 = vpack.c.bf16 %v812_v41, %v808_v40  ;;  %v1841_v32 = vld [vmem:[%s2608_s8 + $0x150] ss:$8 sps:$4 sm:$0xff]   ;;  %v1849_v34 = vld [vmem:[%s2608_s8 + $0x164] ss:$8 sps:$4 sm:$0xff]   ;;  %v1853_v40 = vld [vmem:[%s2608_s8 + $0x180] ss:$8 sps:$4 sm:$0xff]  }
 0x11d   :  { %681 = vmatprep.mubr.f32.mxu0 %v545_v49  ;;  %1503 = vmatprep.mubr.msk.f32.mxu1 %vm605_vm0, %v547_v50  ;;  %v1781_v50 = vld [vmem:[%s2608_s8] ss:$8 sps:$4 sm:$0xff]   ;;  %v1844_v35 = vld [vmem:[%s2608_s8 + $0xf0] ss:$8 sps:$4 sm:$0xff]  }
 0x11e   :  { %1659 = vmatpush1.bf16.msra.mxu1 %v1658_v58  ;;  %v1792_v58 = vld [vmem:[%s2608_s8 + $0x34] ss:$8 sps:$4 sm:$0xff]  }
 0x11f   :  { %1661 = vmatprep.subr.bf16.mxu1 %v1660_v61  ;;  %v1790_v61 = vld [vmem:[%s2608_s8 + $0x30] ss:$8 sps:$4 sm:$0xff]  }
 0x120   :  { %682 = vmatmul.mubr.f32.gmra.mrb[6].mxu0 %v544_v52  ;;  %757 = vmatmul.mubr.f32.gmra.mrb[6].mxu1 %v546_v51  ;;  %v1783_v51 = vld [vmem:[%s2608_s8 + $0x4] ss:$8 sps:$4 sm:$0xff]   ;;  %v1786_v52 = vld [vmem:[%s2608_s8 + $0x14] ss:$8 sps:$4 sm:$0xff]  }
 0x121   :  { %906 = vmatprep.mubr.f32.mxu1 %v1885_v4  ;;  %1323 = vmatprep.subr.bf16.mxu0 %v1783_v51 }
 0x122   :  { %1663 = vmatpush1.bf16.msra.mxu1 %v1662_v0  ;;  %1324 = vmatpush1.bf16.msra.mxu0 %v1781_v50  ;;  %v1823_v0 = vld [vmem:[%s2608_s8 + $0x120] ss:$8 sps:$4 sm:$0xff]  }
 0x123   :  { %1665 = vmatprep.subr.bf16.mxu1 %v1664_v3  ;;  %1325 = vmatprep.subr.bf16.mxu0 %v1786_v52  ;;  %v1798_v3 = vld [vmem:[%s2608_s8 + $0x54] ss:$8 sps:$4 sm:$0xff]  }
 0x126   :  { %1326 = vmatpush1.bf16.msra.mxu0 %v1784_v53  ;;  %v814_v53 = vld [vmem:[%s2607_s7] sm:$0xf]  ;;  %s1886_s7 = smov [#allocation2]  }
 0x127   :  { %1327 = vmatprep.subr.bf16.mxu0 %v1789_v54  ;;  %v819_v54 = vrot.slane %v814_v53, %v2320_v20 }
 0x12a   :  { %1328 = vmatpush1.bf16.msra.mxu0 %v1787_v56  ;;  %v823_v56 = vrot.slane %v814_v53, %v2327_v23 }
 0x12b   :  { %1329 = vmatprep.subr.bf16.mxu0 %v1792_v58 }
 0x12e   :  { %1330 = vmatpush1.bf16.msra.mxu0 %v1790_v61 }
 0x12f   :  { %1331 = vmatprep.subr.bf16.mxu0 %v1795_v63 }
 0x132   :  { %1332 = vmatpush1.bf16.msra.mxu0 %v1793_v1 }
 0x133   :  { %1333 = vmatprep.subr.bf16.mxu0 %v1798_v3 }
 0x1ef   :  { %v1591_v5 = vpop.f32.mrb[4].mxu0  ;;  %v753_v6 = vpop.f32.mrb[4].mxu1 }
 0x1f0   :  { %v1592_v7 = vpop.f32.mrb[5].mxu0  ;;  %v755_v9 = vpop.f32.mrb[5].mxu1 }
 0x1f1   :  { %v1593_v10 = vadd.f32 %v1592_v7, %v1591_v5  ;;  %v1796_v5 = vld [vmem:[%s2608_s8 + $0x50] ss:$8 sps:$4 sm:$0xff]   ;;  %v1799_v7 = vld [vmem:[%s2608_s8 + $0x60] ss:$8 sps:$4 sm:$0xff]  }
 0x1f2   :  { %1334 = vmatpush1.bf16.msra.mxu0 %v1796_v5  ;;  %v1802_v9 = vld [vmem:[%s2608_s8 + $0x70] ss:$8 sps:$4 sm:$0xff]  }
 0x1f3   :  { %v679_v11 = vadd.f32 %v1593_v10, %v1501_v8  ;;  %v1594_v12 = vpop.f32.mrb[6].mxu0  ;;  %v758_v13 = vpop.f32.mrb[6].mxu1  ;;  %v1807_v10 = vld [vmem:[%s2608_s8 + $0x84] ss:$8 sps:$4 sm:$0xff]  }
 0x1f4   :  { %v1595_v14 = vpop.f32.mrb[7].mxu0  ;;  %v760_v15 = vpop.f32.mrb[7].mxu1 }
 0x1f5   :  { %v754_v16 = vadd.f32 %v753_v6, %v679_v11  ;;  %v1596_v17 = vadd.f32 %v1595_v14, %v1594_v12  ;;  %v1801_v6 = vld [vmem:[%s2608_s8 + $0x64] ss:$8 sps:$4 sm:$0xff]   ;;  %v1805_v11 = vld [vmem:[%s2608_s8 + $0x80] ss:$8 sps:$4 sm:$0xff]   ;;  %v1810_v12 = vld [vmem:[%s2608_s8 + $0x94] ss:$8 sps:$4 sm:$0xff]  }
 0x1f6   :  { %1335 = vmatprep.subr.bf16.mxu0 %v1801_v6  ;;  %v1816_v14 = vld [vmem:[%s2608_s8 + $0xa4] ss:$8 sps:$4 sm:$0xff]   ;;  %v1814_v15 = vld [vmem:[%s2608_s8 + $0xa0] ss:$8 sps:$4 sm:$0xff]   ;;  %v831_v6 = vrot.slane %v814_v53, %v128_v24 }
 0x1f7   :  { %763 = vst.msk [vmem:[#allocation2] sm:$0xff] %vm762_vm1, %v754_v16  ;;  %v765_v18 = vmul.f32 0.5, %v754_v16  ;;  %v684_v22 = vadd.f32 %v1596_v17, %v1501_v8  ;;  %v773_v25 = vsel %vm762_vm1, %v754_v16, 0.0  ;;  %v1804_v8 = vld [vmem:[%s2608_s8 + $0x74] ss:$8 sps:$4 sm:$0xff]   ;;  %1336 = vmatpush1.bf16.msra.mxu0 %v1799_v7 }
 0x1f8   :  { %774 = vadd.xlane.f32.xlu0 %v773_v25  ;;  %1337 = vmatprep.subr.bf16.mxu0 %v1804_v8  ;;  %v1822_v16 = vld [vmem:[%s2608_s8 + $0xb4] ss:$8 sps:$4 sm:$0xff]   ;;  %v1820_v17 = vld [vmem:[%s2608_s8 + $0xb0] ss:$8 sps:$4 sm:$0xff]  }
 0x1f9   :  { %v767_v26 = vmul.f32 1.442695, %v765_v18  ;;  %v759_v27 = vadd.f32 %v758_v13, %v684_v22  ;;  %v1808_v13 = vld [vmem:[%s2608_s8 + $0x90] ss:$8 sps:$4 sm:$0xff]   ;;  %v1828_v18 = vld [vmem:[%s2608_s8 + $0xc4] ss:$8 sps:$4 sm:$0xff]  }
 0x1fa   :  { %v1826_v22 = vld [vmem:[%s2608_s8 + $0xc0] ss:$8 sps:$4 sm:$0xff]   ;;  %v1834_v25 = vld [vmem:[%s2608_s8 + $0xd4] ss:$8 sps:$4 sm:$0xff]  }
 0x1fb   :  { %1856 = vpow2.f32 %v767_v26  ;;  %v766_v28 = vmul.f32 0.5, %v759_v27  ;;  %764 = vst.msk [vmem:[#allocation2 + $0x8] sm:$0xff] %vm762_vm1, %v759_v27  ;;  %v776_v29 = vsel %vm762_vm1, %v759_v27, 0.0  ;;  %1338 = vmatpush1.bf16.msra.mxu0 %v1802_v9  ;;  %v1837_v26 = vld [vmem:[%s2608_s8 + $0x144] ss:$8 sps:$4 sm:$0xff]  }
 0x1fc   :  { %777 = vadd.xlane.f32.xlu0 %v776_v29  ;;  %1339 = vmatprep.subr.bf16.mxu0 %v1807_v10  ;;  %v1832_v27 = vld [vmem:[%s2608_s8 + $0xd0] ss:$8 sps:$4 sm:$0xff]   ;;  %v1840_v29 = vld [vmem:[%s2608_s8 + $0xe4] ss:$8 sps:$4 sm:$0xff]  }
 0x1fd   :  { %v769_v30 = vmul.f32 1.442695, %v766_v28  ;;  %v1835_v28 = vld [vmem:[%s2608_s8 + $0x140] ss:$8 sps:$4 sm:$0xff]  }
 0x1ff   :  { %1858 = vpow2.f32 %v769_v30  ;;  %1340 = vmatpush1.bf16.msra.mxu0 %v1805_v11  ;;  %v1843_v30 = vld [vmem:[%s2608_s8 + $0x154] ss:$8 sps:$4 sm:$0xff]  }
 0x200   :  { %1341 = vmatprep.subr.bf16.mxu0 %v1810_v12 }
 0x203   :  { %1342 = vmatpush1.bf16.msra.mxu0 %v1808_v13 }
 0x204   :  { %1343 = vmatprep.subr.bf16.mxu0 %v1816_v14 }
 0x205   :  { %v1857_v36 = vpop.eup %1856 }
 0x206   :  { %v771_v38 = vmul.f32 %v1857_v36, %v44_v33  ;;  %v1847_v36 = vld [vmem:[%s2608_s8 + $0x160] ss:$8 sps:$4 sm:$0xff]  }
 0x207   :  { %1344 = vmatpush1.bf16.msra.mxu0 %v1814_v15 }
 0x208   :  { %1504 = vmatmul.mubr.msk.f32.vlgmr.msra.gmra.mrb[8].mxu1 %vm762_vm1, %v771_v38  ;;  %v781_v43 = vmul.f32 %v771_v38, %v44_v33  ;;  %1345 = vmatprep.subr.bf16.mxu0 %v1822_v16  ;;  %v1846_v33 = vld [vmem:[%s2608_s8 + $0xf4] ss:$8 sps:$4 sm:$0xff]  }
 0x209   :  { %v1859_v44 = vpop.eup %1858  ;;  %1667 = vmatpush1.bf16.msra.mxu1 %v1666_v37  ;;  %912 = vmatprep.mubr.f32.mxu1 %v1885_v4  ;;  %v1852_v37 = vld [vmem:[%s2608_s8 + $0x174] ss:$8 sps:$4 sm:$0xff]  }
 0x20a   :  { %1669 = vmatprep.subr.bf16.mxu1 %v1668_v39  ;;  %v783_v46 = vsel %vm762_vm1, %v781_v43, 0.0  ;;  %v772_v47 = vmul.f32 %v1859_v44, %v45_v42  ;;  %v1855_v39 = vld [vmem:[%s2608_s8 + $0x184] ss:$8 sps:$4 sm:$0xff]  }
 0x20b   :  { %784 = vadd.xlane.f32.xlu1 %v783_v46  ;;  %1346 = vmatpush1.bf16.msra.mxu0 %v1820_v17 }
 0x20c   :  { %1505 = vmatmul.mubr.msk.f32.gmra.mrb[10].mxu1 %vm762_vm1, %v772_v47  ;;  %v782_v48 = vmul.f32 %v772_v47, %v45_v42  ;;  %1347 = vmatprep.subr.bf16.mxu0 %v1828_v18 }
 0x20d   :  { %1671 = vmatpush1.bf16.msra.mxu1 %v1670_v45  ;;  %983 = vmatprep.mubr.f32.mxu1 %v1885_v4 }
 0x20e   :  { %v786_v49 = vsel %vm762_vm1, %v782_v48, 0.0  ;;  %1366 = vmatprep.subr.bf16.mxu1 %v1813_v57 }
 0x20f   :  { %787 = vadd.xlane.f32.xlu1 %v786_v49  ;;  %1348 = vmatpush1.bf16.msra.mxu0 %v1826_v22 }
 0x210   :  { %1506 = vmatmul.mubr.msk.f32.vlgmr.msra.gmra.mrb[12].mxu1 %vm762_vm1, %v771_v38  ;;  %1349 = vmatprep.subr.bf16.mxu0 %v1834_v25  ;;  %v1850_v38 = vld [vmem:[%s2608_s8 + $0x170] ss:$8 sps:$4 sm:$0xff]  }
 0x211   :  { %989 = vmatprep.mubr.f32.mxu1 %v1885_v4  ;;  %1367 = vmatpush1.bf16.msra.mxu1 %v1811_v55  ;;  %v1829_v4 = vld [vmem:[%s2608_s8 + $0x130] ss:$8 sps:$4 sm:$0xff]  }
 0x212   :  { %1368 = vmatprep.subr.bf16.mxu1 %v1819_v59 }
 0x213   :  { %1350 = vmatpush1.bf16.msra.mxu0 %v1832_v27 }
 0x214   :  { %1507 = vmatmul.mubr.msk.f32.gmra.mrb[14].mxu1 %vm762_vm1, %v772_v47  ;;  %1351 = vmatprep.subr.bf16.mxu0 %v1840_v29 }
 0x215   :  { %1369 = vmatpush1.bf16.msra.mxu1 %v1817_v60 }
 0x216   :  { %1370 = vmatprep.subr.bf16.mxu1 %v1825_v62 }
 0x217   :  { %1352 = vmatpush1.bf16.msra.mxu0 %v1838_v31 }
 0x218   :  { %1353 = vmatprep.subr.bf16.mxu0 %v1846_v33 }
 0x219   :  { %1371 = vmatpush1.bf16.msra.mxu1 %v1823_v0 }
 0x21a   :  { %1372 = vmatprep.subr.bf16.mxu1 %v1831_v2  ;;  %v827_v2 = vrot.slane %v814_v53, %v124_v21 }
 0x21b   :  { %1354 = vmatpush1.bf16.msra.mxu0 %v1844_v35 }
 0x21d   :  { %1373 = vmatpush1.bf16.msra.mxu1 %v1829_v4 }
 0x21e   :  { %1374 = vmatprep.subr.bf16.mxu1 %v1837_v26 }
 0x221   :  { %1375 = vmatpush1.bf16.msra.mxu1 %v1835_v28 }
 0x222   :  { %1376 = vmatprep.subr.bf16.mxu1 %v1843_v30 }
 0x225   :  { %1377 = vmatpush1.bf16.msra.mxu1 %v1841_v32 }
 0x226   :  { %1378 = vmatprep.subr.bf16.mxu1 %v1849_v34 }
 0x229   :  { %1379 = vmatpush1.bf16.msra.mxu1 %v1847_v36 }
 0x22a   :  { %1380 = vmatprep.subr.bf16.mxu1 %v1852_v37 }
 0x22d   :  { %1381 = vmatpush1.bf16.msra.mxu1 %v1850_v38 }
 0x22e   :  { %1382 = vmatprep.subr.bf16.mxu1 %v1855_v39 }
 0x231   :  { %1383 = vmatpush1.bf16.msra.mxu1 %v1853_v40 }
 0x285   :  { %v775_v41 = vpop.xlane.xlu0 %774 }
 0x286   :  { %v779_v42 = vmul.f32 0.5, %v775_v41 }
 0x288   :  { %v789_v44 = vadd.f32 58.812065, %v779_v42 }
 0x289   :  { %v778_v43 = vpop.xlane.xlu0 %777 }
 0x28a   :  { %v780_v45 = vmul.f32 0.5, %v778_v43 }
 0x28c   :  { %v790_v48 = vadd.f32 58.812065, %v780_v45 }
 0x298   :  { %v785_v46 = vpop.xlane.xlu1 %784 }
 0x299   :  { %v791_v47 = vadd.f32 %v789_v44, %v785_v46 }
 0x29b   :  { %v793_v49 = vmul.f32 -0.5, %v791_v47 }
 0x29c   :  { %v788_v50 = vpop.xlane.xlu1 %787 }
 0x29d   :  { %796 = vst.msk [vmem:[%s2612_s12] sm:$0xff] %vm795_vm2, %v793_v49  ;;  %v792_v51 = vadd.f32 %v790_v48, %v788_v50 }
 0x29f   :  { %v794_v52 = vmul.f32 -0.5, %v792_v51 }
 0x2a1   :  { %797 = vst.msk [vmem:[%s2612_s12 + $0x8] sm:$0xff] %vm795_vm2, %v794_v52  ;;  %s1420_s12 = sshll.u32 %s1886_s7, 4  ;;  %s1421_s12 = int_to_ptr.vmem [resolvable:$true] %s1420_s12 }
 0x2a2   :  { %s1860_s29 = scalar_lea.vmem %s1421_s12, 256  ;;  %p1865_p1 = scmp.lt.s32.totalorder %s1421_s12, %s1421_s12 }
 0x2a3   :  { %p1861_p0 = scmp.ne.s32.totalorder %s1421_s12, %s1860_s29  ;;  %p1866_p2 = scmp.lt.s32.totalorder %s1860_s29, %s1860_s29 }
 0x2a5   :  { %p1867_p3 = por %p1866_p2, %p1865_p1 }
 0x2a7   :  { %p1868_p4 = pnand %p1867_p3, %p1861_p0 }
 0x2db   :  { %v908_v55 = vpop.f32.mrb[8].mxu1 }
 0x2dc   :  { %v910_v57 = vpop.f32.mrb[9].mxu1  ;;  %v909_v58 = vadd.f32 %v908_v55, %v819_v54 }
 0x2dd   :  { %v911_v59 = vadd.f32 %v910_v57, %v823_v56 }
 0x2de   :  { %v996_v0 = vmax.f32 %v909_v58, 0.0 }
 0x2df   :  { %v914_v60 = vpop.f32.mrb[10].mxu1  ;;  %v997_v3 = vmax.f32 %v911_v59, 0.0 }
 0x2e0   :  { %v915_v61 = vadd.f32 %v914_v60, %v819_v54  ;;  %v916_v62 = vpop.f32.mrb[11].mxu1 }
 0x2e1   :  { %v917_v63 = vadd.f32 %v916_v62, %v823_v56 }
 0x2e2   :  { %v1000_v1 = vmax.f32 %v915_v61, 0.0 }
 0x2e3   :  { %v1001_v4 = vmax.f32 %v917_v63, 0.0  ;;  %v985_v5 = vpop.f32.mrb[12].mxu1 }
 0x2e4   :  { %v1004_v7 = vpack.c.bf16 %v1000_v1, %v996_v0  ;;  %v987_v8 = vpop.f32.mrb[13].mxu1  ;;  %v986_v10 = vadd.f32 %v985_v5, %v827_v2 }
 0x2e5   :  { %v1005_v9 = vpack.c.bf16 %v1001_v4, %v997_v3  ;;  %v988_v11 = vadd.f32 %v987_v8, %v831_v6 }
 0x2e6   :  { %v998_v16 = vmax.f32 %v986_v10, 0.0 }
 0x2e7   :  { %v991_v12 = vpop.f32.mrb[14].mxu1  ;;  %1355 = vmatprep.mubr.bf16.mxu0 %v1005_v9  ;;  %v999_v21 = vmax.f32 %v988_v11, 0.0 }
 0x2e8   :  { %v992_v13 = vadd.f32 %v991_v12, %v827_v2  ;;  %v993_v14 = vpop.f32.mrb[15].mxu1  ;;  %1356 = vmatmul.mubr.bf16.vlgmr.msra.gmra.mrb[8].mxu0 %v1004_v7 }
 0x2e9   :  { %v994_v15 = vadd.f32 %v993_v14, %v831_v6 }
 0x2ea   :  { %v1002_v17 = vmax.f32 %v992_v13, 0.0 }
 0x2eb   :  { %v1003_v18 = vmax.f32 %v994_v15, 0.0 }
 0x2ec   :  { %v1006_v22 = vpack.c.bf16 %v1002_v17, %v998_v16 }
 0x2ed   :  { %v1007_v25 = vpack.c.bf16 %v1003_v18, %v999_v21 }
 0x2ef   :  { %1558 = vmatprep.mubr.msk.bf16.mxu1 %vm605_vm0, %v1007_v25 }
 0x2f0   :  { %1399 = vmatmul.mubr.bf16.vlgmr.msra.gmra.mrb[16].mxu1 %v1006_v22 }
 0x2f1   :  { %1871 = shalt.err (!%p1868_p4)
}
 0x2f2   :  { %s1872_s14 = scalar_lea.hbm %s2611_s11, 256 }
 0x2f3   :  { %p1873_p5 = scmp.ne.s32.totalorder %s2611_s11, %s1872_s14  ;;  %p1876_p6 = scmp.lt.u32.totalorder %s1872_s14, %s2611_s11 }
 0x2f5   :  { %p1878_p7 = pnand %p1876_p6, %p1873_p5 }
 0x2f7   :  { %1881 = shalt.err (!%p1878_p7)
}
 0x2f8   :  { %s1887_s16 = smov 128   ;;  %s1888_s17 = smov 8   ;;  %v1058_v19 = vld [vmem:[%s2609_s9] sm:$0x3] }
 0x2f9   :  { %1426 = dma.vmem_to_hbm [thread:$0]  %s1421_s12, 256, %s2611_s11, [#allocation3], %s1887_s16, %s1887_s16, %s1888_s17   ;;  %v1063_v28 = vrot.slane %v1058_v19, %v2320_v20  ;;  %v1067_v30 = vrot.slane %v1058_v19, %v2327_v23 }
 0x3bb   :  { %v1357_v24 = vpop.f32.mrb[8].mxu0 }
 0x3bc   :  { %v1359_v26 = vpop.f32.mrb[9].mxu0  ;;  %v1358_v31 = vadd.f32 %v1357_v24, %v1063_v28 }
 0x3bd   :  { %v1361_v27 = vpop.f32.mrb[10].mxu0  ;;  %v1360_v32 = vadd.f32 %v1359_v26, %v1067_v30 }
 0x3be   :  { %v1363_v29 = vpop.f32.mrb[11].mxu0  ;;  %v1362_v34 = vadd.f32 %v1361_v27, %v1063_v28 }
 0x3bf   :  { %v1364_v37 = vadd.f32 %v1363_v29, %v1067_v30 }
 0x3c3   :  { %v1400_v33 = vpop.f32.mrb[16].mxu1 }
 0x3c4   :  { %v1401_v35 = vadd.f32 %v1400_v33, %v1358_v31  ;;  %v1402_v36 = vpop.f32.mrb[17].mxu1 }
 0x3c5   :  { %v1403_v38 = vadd.f32 %v1402_v36, %v1360_v32  ;;  %v1404_v39 = vpop.f32.mrb[18].mxu1 }
 0x3c6   :  { %1409 = vst [vmem:[%s2610_s10] sm:$0xff] %v1401_v35  ;;  %v1405_v40 = vadd.f32 %v1404_v39, %v1362_v34  ;;  %v1406_v41 = vpop.f32.mrb[19].mxu1 }
 0x3c7   :  { %1410 = vst [vmem:[%s2610_s10 + $0x8] sm:$0xff] %v1403_v38  ;;  %v1407_v20 = vadd.f32 %v1406_v41, %v1364_v37 }
 0x3c8   :  { %1411 = vst [vmem:[%s2610_s10 + $0x10] sm:$0xff] %v1405_v40 }
 0x3c9   :  { %1412 = vst [vmem:[%s2610_s10 + $0x18] sm:$0xff] %v1407_v20 }
 0x3ca   :  { %1882 = dma.done.wait [#allocation3], 256  }
 0x3cb   :  { %1883 = vsyncadd [#allocation3], 4294967040 }
 0x3cc   :  { %1436 = vsyncpa [#allocation3], 1 }

</bundles_post_ra>
